<compile_context>
chip_gen: v6e
topology: v6e:2x2x1
jax: 0.10.0
libtpu: 0.0.40
codegen_flags: <defaults>
</compile_context>

<pallas_src>
import math
from functools import partial

import jax
import jax.numpy as jnp
from jax.experimental import pallas as pl
from jax.experimental.pallas import tpu as pltpu

LN_EPS = 1e-5


def _fp_block_kernel(x_ref, w_ref, b_ref, g_ref, bb_ref, a_ref, o_ref, acc_ref,
                     *, fuse_ln_prelu):
    # x_ref : (TB, C*cin)     streamed per B-tile
    # w_ref : (C, cin, cout)  resident weights
    # b_ref : (C, 1, cout)    resident bias (f32)
    # g_ref : (1, C*cout)     resident LayerNorm gamma (f32)
    # bb_ref: (1, C*cout)     resident LayerNorm beta  (f32)
    # a_ref : (1, 1)          PReLU slope (f32)
    # o_ref : (TB, C*cout)
    # acc_ref: (TB, C*cout)   f32 scratch (pre-norm activations)
    C, cin, cout = w_ref.shape
    for c in range(C):  # C (num metapaths) is small & static -> unrolled
        xc = x_ref[:, c * cin:(c + 1) * cin]                      # lane-aligned slice
        yc = jnp.dot(xc, w_ref[c], preferred_element_type=jnp.float32) + b_ref[c]
        if fuse_ln_prelu:
            acc_ref[:, c * cout:(c + 1) * cout] = yc
        else:
            o_ref[:, c * cout:(c + 1) * cout] = yc.astype(o_ref.dtype)

    if fuse_ln_prelu:
        y = acc_ref[...]
        # nn.LayerNorm([C, cout]): normalize each node over its C*cout features,
        # which is exactly the (lane) row of the flattened tile.
        mean = jnp.mean(y, axis=-1, keepdims=True)
        d = y - mean
        var = jnp.mean(d * d, axis=-1, keepdims=True)
        y = d * jax.lax.rsqrt(var + LN_EPS)
        y = y * g_ref[...] + bb_ref[...]
        a = a_ref[...]                                            # (1,1) broadcast
        y = jnp.where(y >= 0.0, y, a * y)                         # PReLU (shared slope)
        o_ref[...] = y.astype(o_ref.dtype)


def _pick_block_b(B, C, cin, cout, in_bytes, out_bytes, weights_bytes,
                  vmem_budget_bytes):
    """Largest B-tile whose working set (double-buffered I/O + f32 scratch)
    fits the VMEM budget."""
    sub = 8 if in_bytes >= 4 else 16                 # sublane multiple for dtype
    row_bytes = 2 * (C * cin * in_bytes + C * cout * out_bytes)   # 2x-buffered in/out
    row_bytes += C * cout * 4                                     # f32 acc scratch
    budget = max(vmem_budget_bytes - 2 * weights_bytes, 1 << 20)
    tb = budget // row_bytes
    tb = max(sub, min(int(tb), 2048))
    if tb >= 128:
        tb -= tb % 128                               # MXU / lane friendly
    else:
        tb -= tb % sub
    b_ceil = -(-B // sub) * sub                      # no point in TB > padded B
    return min(tb, b_ceil)


def _projection_call(x, W, bias, ln_gamma, ln_beta, prelu_a, *, fuse_ln_prelu,
                     block_b=None, compute_dtype=None, out_dtype=None,
                     vmem_budget_bytes=24 * 1024 * 1024):
    """x: [B, C, cin], W: [C, cin, cout], bias/gamma/beta: [C, cout] -> [B, C, cout]."""
    B, C, cin = x.shape
    Cw, cin_w, cout = W.shape
    assert (C, cin) == (Cw, cin_w) and bias.shape == (C, cout)

    cdt = jnp.dtype(compute_dtype) if compute_dtype is not None else jnp.dtype(x.dtype)
    odt = jnp.dtype(out_dtype) if out_dtype is not None else jnp.dtype(x.dtype)

    # Free reshapes (collapse contiguous trailing dims) -- no HBM transposes.
    x2 = x.reshape(B, C * cin).astype(cdt)
    Wc = W.astype(cdt)
    b3 = bias.reshape(C, 1, cout).astype(jnp.float32)
    g2 = jnp.asarray(ln_gamma, jnp.float32).reshape(1, C * cout)
    bb2 = jnp.asarray(ln_beta, jnp.float32).reshape(1, C * cout)
    a2 = jnp.asarray(prelu_a, jnp.float32).reshape(1, 1)

    in_bytes = cdt.itemsize
    out_bytes = odt.itemsize
    weights_bytes = C * cin * cout * in_bytes + 3 * C * cout * 4 + 4

    if block_b is None:
        block_b = _pick_block_b(B, C, cin, cout, in_bytes, out_bytes,
                                weights_bytes, vmem_budget_bytes)
    grid_b = pl.cdiv(B, block_b)
    B_pad = grid_b * block_b
    if B_pad != B:
        x2 = jnp.pad(x2, ((0, B_pad - B), (0, 0)))

    vmem_limit = int(min(max(
        2 * weights_bytes
        + 2 * block_b * (C * cin * in_bytes + C * cout * out_bytes)
        + block_b * C * cout * 4
        + (4 << 20),                                  # margin for internal scratch
        16 << 20), 64 << 20))                         # fits every generation

    kernel = partial(_fp_block_kernel, fuse_ln_prelu=fuse_ln_prelu)

    out2 = pl.pallas_call(
        kernel,
        out_shape=jax.ShapeDtypeStruct((B_pad, C * cout), odt),
        grid_spec=pltpu.PrefetchScalarGridSpec(
            num_scalar_prefetch=0,
            grid=(grid_b,),
            in_specs=[
                # Streamed per B-tile (last dim is the full, lane-dense C*cin).
                pl.BlockSpec((block_b, C * cin), lambda i: (i, 0)),
                # Resident params: constant block index -> DMA'd once.
                pl.BlockSpec((C, cin, cout), lambda i: (0, 0, 0)),
                pl.BlockSpec((C, 1, cout), lambda i: (0, 0, 0)),
                pl.BlockSpec((1, C * cout), lambda i: (0, 0)),
                pl.BlockSpec((1, C * cout), lambda i: (0, 0)),
                pl.BlockSpec((1, 1), lambda i: (0, 0)),
            ],
            out_specs=pl.BlockSpec((block_b, C * cout), lambda i: (i, 0)),
            scratch_shapes=[pltpu.VMEM((block_b, C * cout), jnp.float32)],
        ),
        compiler_params=pltpu.CompilerParams(
            dimension_semantics=("parallel",),
            vmem_limit_bytes=vmem_limit,
        ),
    )(x2, Wc, b3, g2, bb2, a2)

    return out2[:B].reshape(B, C, cout)


def linear_per_metapath(x, W, bias, **kw):
    """Plain LinearPerMetapath:  einsum('bcm,cmn->bcn', x, W) + bias."""
    C, cout = bias.shape
    ones = jnp.ones((C, cout), jnp.float32)
    zeros = jnp.zeros((C, cout), jnp.float32)
    return _projection_call(x, W, bias, ones, zeros, 0.0,
                            fuse_ln_prelu=False, **kw)


def feature_projection_block(x, W, bias, ln_gamma, ln_beta, prelu_a, **kw):
    """One SeHGNN feature-projection block, fused:
       LinearPerMetapath -> LayerNorm([C, cout]) -> PReLU  (Dropout = identity)."""
    return _projection_call(x, W, bias, ln_gamma, ln_beta, prelu_a,
                            fuse_ln_prelu=True, **kw)


def init_params(key, num_metapaths, cin, cout, dtype=jnp.float32):
    """Matches LinearPerMetapath.reset_parameters(): xavier_uniform_ over the
    last two dims with gain = calculate_gain('relu'), bias = zeros."""
    gain = math.sqrt(2.0)
    std = gain * math.sqrt(2.0 / float(cin + cout))
    a = math.sqrt(3.0) * std
    W = jax.random.uniform(
        key, (num_metapaths, cin, cout), dtype=dtype, minval=-a, maxval=a)
    bias = jnp.zeros((num_metapaths, cout), dtype=dtype)
    return W, bias


# --- pure-JAX references -------------------------------------------------------
def ref_linear_per_metapath(x, W, bias):
    return jnp.einsum("bcm,cmn->bcn", x, W,
                      precision=jax.lax.Precision.HIGHEST) + bias[None]


def ref_fp_block(x, W, bias, gamma, beta, prelu_a):
    y = ref_linear_per_metapath(x, W, bias)
    B, C, cout = y.shape
    yf = y.reshape(B, C * cout)
    mean = yf.mean(-1, keepdims=True)
    var = ((yf - mean) ** 2).mean(-1, keepdims=True)
    yn = (yf - mean) / jnp.sqrt(var + LN_EPS)
    yn = yn * gamma.reshape(1, -1) + beta.reshape(1, -1)
    yn = jnp.where(yn >= 0.0, yn, prelu_a * yn)
    return yn.reshape(B, C, cout)


if __name__ == "__main__":
    key = jax.random.PRNGKey(0)
    k_x, k_w0, k_w1, k_g = jax.random.split(key, 4)

    # SeHGNN-like small shapes: B nodes, C metapaths, embed = hidden = 128.
    B, C, embed, hidden = 512, 4, 128, 128

    x = jax.random.normal(k_x, (B, C, embed), dtype=jnp.float32)

    # Layer 0 params: LinearPerMetapath(embed->hidden), LayerNorm([C,hidden]), PReLU.
    W0, b0 = init_params(k_w0, C, embed, hidden)
    g0 = 1.0 + 0.1 * jax.random.normal(k_g, (C, hidden), dtype=jnp.float32)
    beta0 = jnp.full((C, hidden), 0.05, dtype=jnp.float32)
    a0 = jnp.float32(0.25)

    # 1) Plain LinearPerMetapath kernel vs einsum reference.
    out_lin = jax.block_until_ready(linear_per_metapath(x, W0, b0, block_b=128))
    ref_lin = ref_linear_per_metapath(x, W0, b0)
    assert out_lin.shape == (B, C, hidden)
    assert jnp.allclose(out_lin, ref_lin, atol=1e-3, rtol=1e-3)

    # 2) Fused projection block (Linear + LayerNorm + PReLU) vs reference.
    out_fp = jax.block_until_ready(
        feature_projection_block(x, W0, b0, g0, beta0, a0, block_b=128))
    ref_fp = ref_fp_block(x, W0, b0, g0, beta0, a0)
    assert out_fp.shape == (B, C, hidden)
    assert jnp.allclose(out_fp, ref_fp, atol=1e-3, rtol=1e-3)

    # 3) Second stacked projection block (n_fp_layers = 2), run with bf16
    #    operands + f32 accumulation / f32 LayerNorm stats (v6e/v7x fast path).
    W1, b1 = init_params(k_w1, C, hidden, hidden)
    g1 = jnp.ones((C, hidden), jnp.float32)
    beta1 = jnp.zeros((C, hidden), jnp.float32)
    out2 = jax.block_until_ready(
        feature_projection_block(out_fp, W1, b1, g1, beta1, a0,
                                 compute_dtype=jnp.bfloat16))
    ref2 = ref_fp_block(out_fp, W1, b1, g1, beta1, a0)
    assert out2.shape == (B, C, hidden)
    assert jnp.allclose(out2, ref2, atol=2e-1, rtol=5e-2)

    print("KERNEL_OK")
</pallas_src>

<mosaic_0001>
module attributes {stable_mosaic.version = 11 : i64} {
  func.func @_fp_block_kernel(%arg0: i32, %arg1: memref<128x512xf32, #tpu.memory_space<vmem>>, %arg2: memref<4x128x128xf32, #tpu.memory_space<vmem>>, %arg3: memref<4x1x128xf32, #tpu.memory_space<vmem>>, %arg4: memref<1x512xf32, #tpu.memory_space<vmem>>, %arg5: memref<1x512xf32, #tpu.memory_space<vmem>>, %arg6: memref<1x1xf32, #tpu.memory_space<vmem>>, %arg7: memref<128x512xf32, #tpu.memory_space<vmem>>, %arg8: memref<128x512xf32, #tpu.memory_space<vmem>>) attributes {dimension_semantics = [#tpu.dimension_semantics<parallel>], iteration_bounds = array<i64: 4>, scalar_prefetch = 0 : i64, scratch_operands = 1 : i64, tpu.core_type = #tpu.core_type<tc>, window_params = [{transform_indices = @transform_0, window_bounds = array<i64: 128, 512>}, {pipeline_mode = #tpu.pipeline_mode<synchronous>, transform_indices = @transform_1, window_bounds = array<i64: 4, 128, 128>}, {pipeline_mode = #tpu.pipeline_mode<synchronous>, transform_indices = @transform_2, window_bounds = array<i64: 4, 1, 128>}, {pipeline_mode = #tpu.pipeline_mode<synchronous>, transform_indices = @transform_3, window_bounds = array<i64: 1, 512>}, {pipeline_mode = #tpu.pipeline_mode<synchronous>, transform_indices = @transform_4, window_bounds = array<i64: 1, 512>}, {pipeline_mode = #tpu.pipeline_mode<synchronous>, transform_indices = @transform_5, window_bounds = array<i64: 1, 1>}, {transform_indices = @transform_6, window_bounds = array<i64: 128, 512>}]} {
    %c0 = arith.constant 0 : index
    %c0_0 = arith.constant 0 : index
    %0 = vector.load %arg1[%c0, %c0_0] : memref<128x512xf32, #tpu.memory_space<vmem>>, vector<128x128xf32>
    %c0_1 = arith.constant 0 : index
    %c0_2 = arith.constant 0 : index
    %c0_3 = arith.constant 0 : index
    %1 = vector.load %arg2[%c0_1, %c0_2, %c0_3] : memref<4x128x128xf32, #tpu.memory_space<vmem>>, vector<1x128x128xf32>
    %2 = vector.shape_cast %1 : vector<1x128x128xf32> to vector<128x128xf32>
    %cst = arith.constant dense<0.000000e+00> : vector<128x128xf32>
    %3 = tpu.matmul %0, %2, %cst {dimension_numbers = #tpu.dot_dimension_numbers<[1], [0], [0], [1], [0, 0, 1, 1], [], []>} : vector<128x128xf32>, vector<128x128xf32>, vector<128x128xf32> -> vector<128x128xf32>
    %c0_4 = arith.constant 0 : index
    %c0_5 = arith.constant 0 : index
    %c0_6 = arith.constant 0 : index
    %4 = vector.load %arg3[%c0_4, %c0_5, %c0_6] : memref<4x1x128xf32, #tpu.memory_space<vmem>>, vector<1x1x128xf32>
    %5 = vector.shape_cast %4 : vector<1x1x128xf32> to vector<1x128xf32>
    %6 = vector.broadcast %5 : vector<1x128xf32> to vector<128x128xf32>
    %7 = arith.addf %3, %6 : vector<128x128xf32>
    %c0_7 = arith.constant 0 : index
    %c0_8 = arith.constant 0 : index
    %8 = vector.load %arg7[%c0_7, %c0_8] : memref<128x512xf32, #tpu.memory_space<vmem>>, vector<128x128xf32>
    tpu.vector_store %arg7[%c0_7, %c0_8], %7 {strides = array<i32>} : memref<128x512xf32, #tpu.memory_space<vmem>>, vector<128x128xf32>,
    %c0_9 = arith.constant 0 : index
    %c128 = arith.constant 128 : index
    %9 = vector.load %arg1[%c0_9, %c128] : memref<128x512xf32, #tpu.memory_space<vmem>>, vector<128x128xf32>
    %c1 = arith.constant 1 : index
    %c0_10 = arith.constant 0 : index
    %c0_11 = arith.constant 0 : index
    %10 = vector.load %arg2[%c1, %c0_10, %c0_11] : memref<4x128x128xf32, #tpu.memory_space<vmem>>, vector<1x128x128xf32>
    %11 = vector.shape_cast %10 : vector<1x128x128xf32> to vector<128x128xf32>
    %cst_12 = arith.constant dense<0.000000e+00> : vector<128x128xf32>
    %12 = tpu.matmul %9, %11, %cst_12 {dimension_numbers = #tpu.dot_dimension_numbers<[1], [0], [0], [1], [0, 0, 1, 1], [], []>} : vector<128x128xf32>, vector<128x128xf32>, vector<128x128xf32> -> vector<128x128xf32>
    %c1_13 = arith.constant 1 : index
    %c0_14 = arith.constant 0 : index
    %c0_15 = arith.constant 0 : index
    %13 = vector.load %arg3[%c1_13, %c0_14, %c0_15] : memref<4x1x128xf32, #tpu.memory_space<vmem>>, vector<1x1x128xf32>
    %14 = vector.shape_cast %13 : vector<1x1x128xf32> to vector<1x128xf32>
    %15 = vector.broadcast %14 : vector<1x128xf32> to vector<128x128xf32>
    %16 = arith.addf %12, %15 : vector<128x128xf32>
    %c0_16 = arith.constant 0 : index
    %c128_17 = arith.constant 128 : index
    %17 = vector.load %arg7[%c0_16, %c128_17] : memref<128x512xf32, #tpu.memory_space<vmem>>, vector<128x128xf32>
    tpu.vector_store %arg7[%c0_16, %c128_17], %16 {strides = array<i32>} : memref<128x512xf32, #tpu.memory_space<vmem>>, vector<128x128xf32>,
    %c0_18 = arith.constant 0 : index
    %c256 = arith.constant 256 : index
    %18 = vector.load %arg1[%c0_18, %c256] : memref<128x512xf32, #tpu.memory_space<vmem>>, vector<128x128xf32>
    %c2 = arith.constant 2 : index
    %c0_19 = arith.constant 0 : index
    %c0_20 = arith.constant 0 : index
    %19 = vector.load %arg2[%c2, %c0_19, %c0_20] : memref<4x128x128xf32, #tpu.memory_space<vmem>>, vector<1x128x128xf32>
    %20 = vector.shape_cast %19 : vector<1x128x128xf32> to vector<128x128xf32>
    %cst_21 = arith.constant dense<0.000000e+00> : vector<128x128xf32>
    %21 = tpu.matmul %18, %20, %cst_21 {dimension_numbers = #tpu.dot_dimension_numbers<[1], [0], [0], [1], [0, 0, 1, 1], [], []>} : vector<128x128xf32>, vector<128x128xf32>, vector<128x128xf32> -> vector<128x128xf32>
    %c2_22 = arith.constant 2 : index
    %c0_23 = arith.constant 0 : index
    %c0_24 = arith.constant 0 : index
    %22 = vector.load %arg3[%c2_22, %c0_23, %c0_24] : memref<4x1x128xf32, #tpu.memory_space<vmem>>, vector<1x1x128xf32>
    %23 = vector.shape_cast %22 : vector<1x1x128xf32> to vector<1x128xf32>
    %24 = vector.broadcast %23 : vector<1x128xf32> to vector<128x128xf32>
    %25 = arith.addf %21, %24 : vector<128x128xf32>
    %c0_25 = arith.constant 0 : index
    %c256_26 = arith.constant 256 : index
    %26 = vector.load %arg7[%c0_25, %c256_26] : memref<128x512xf32, #tpu.memory_space<vmem>>, vector<128x128xf32>
    tpu.vector_store %arg7[%c0_25, %c256_26], %25 {strides = array<i32>} : memref<128x512xf32, #tpu.memory_space<vmem>>, vector<128x128xf32>,
    %c0_27 = arith.constant 0 : index
    %c384 = arith.constant 384 : index
    %27 = vector.load %arg1[%c0_27, %c384] : memref<128x512xf32, #tpu.memory_space<vmem>>, vector<128x128xf32>
    %c3 = arith.constant 3 : index
    %c0_28 = arith.constant 0 : index
    %c0_29 = arith.constant 0 : index
    %28 = vector.load %arg2[%c3, %c0_28, %c0_29] : memref<4x128x128xf32, #tpu.memory_space<vmem>>, vector<1x128x128xf32>
    %29 = vector.shape_cast %28 : vector<1x128x128xf32> to vector<128x128xf32>
    %cst_30 = arith.constant dense<0.000000e+00> : vector<128x128xf32>
    %30 = tpu.matmul %27, %29, %cst_30 {dimension_numbers = #tpu.dot_dimension_numbers<[1], [0], [0], [1], [0, 0, 1, 1], [], []>} : vector<128x128xf32>, vector<128x128xf32>, vector<128x128xf32> -> vector<128x128xf32>
    %c3_31 = arith.constant 3 : index
    %c0_32 = arith.constant 0 : index
    %c0_33 = arith.constant 0 : index
    %31 = vector.load %arg3[%c3_31, %c0_32, %c0_33] : memref<4x1x128xf32, #tpu.memory_space<vmem>>, vector<1x1x128xf32>
    %32 = vector.shape_cast %31 : vector<1x1x128xf32> to vector<1x128xf32>
    %33 = vector.broadcast %32 : vector<1x128xf32> to vector<128x128xf32>
    %34 = arith.addf %30, %33 : vector<128x128xf32>
    %c0_34 = arith.constant 0 : index
    %c384_35 = arith.constant 384 : index
    %35 = vector.load %arg7[%c0_34, %c384_35] : memref<128x512xf32, #tpu.memory_space<vmem>>, vector<128x128xf32>
    tpu.vector_store %arg7[%c0_34, %c384_35], %34 {strides = array<i32>} : memref<128x512xf32, #tpu.memory_space<vmem>>, vector<128x128xf32>,
    return
  }
  func.func @transform_0(%arg0: i32) -> (i32, i32) {
    %c0_i32 = arith.constant 0 : i32
    %c0_i32_0 = arith.constant 0 : i32
    return %arg0, %c0_i32 : i32, i32
  }
  func.func @transform_1(%arg0: i32) -> (i32, i32, i32) {
    %c0_i32 = arith.constant 0 : i32
    %c0_i32_0 = arith.constant 0 : i32
    %c0_i32_1 = arith.constant 0 : i32
    %c0_i32_2 = arith.constant 0 : i32
    return %c0_i32, %c0_i32_0, %c0_i32_1 : i32, i32, i32
  }
  func.func @transform_2(%arg0: i32) -> (i32, i32, i32) {
    %c0_i32 = arith.constant 0 : i32
    %c0_i32_0 = arith.constant 0 : i32
    %c0_i32_1 = arith.constant 0 : i32
    %c0_i32_2 = arith.constant 0 : i32
    return %c0_i32, %c0_i32_0, %c0_i32_1 : i32, i32, i32
  }
  func.func @transform_3(%arg0: i32) -> (i32, i32) {
    %c0_i32 = arith.constant 0 : i32
    %c0_i32_0 = arith.constant 0 : i32
    %c0_i32_1 = arith.constant 0 : i32
    return %c0_i32, %c0_i32_0 : i32, i32
  }
  func.func @transform_4(%arg0: i32) -> (i32, i32) {
    %c0_i32 = arith.constant 0 : i32
    %c0_i32_0 = arith.constant 0 : i32
    %c0_i32_1 = arith.constant 0 : i32
    return %c0_i32, %c0_i32_0 : i32, i32
  }
  func.func @transform_5(%arg0: i32) -> (i32, i32) {
    %c0_i32 = arith.constant 0 : i32
    %c0_i32_0 = arith.constant 0 : i32
    %c0_i32_1 = arith.constant 0 : i32
    return %c0_i32, %c0_i32_0 : i32, i32
  }
  func.func @transform_6(%arg0: i32) -> (i32, i32) {
    %c0_i32 = arith.constant 0 : i32
    %c0_i32_0 = arith.constant 0 : i32
    return %arg0, %c0_i32 : i32, i32
  }
}

</mosaic_0001>

<bundles_post_ra>
// kernel: tpu_custom_call.1
= control target key start
LH: loop header
LB: loop body
LE: loop exit
PB: predicated region body
PF: predicated region fallthrough
CT: control target
= control target key end

     0   :  { %13 = vsyncpa [#allocation5], 0  ;;  %s2273_s0 = inlined_call_operand.hbm [shape: f32[512,512], index: 0, kind: input, shape index: {}]   ;;  %s2274_s1 = inlined_call_operand.hbm [shape: f32[4,128,128], index: 1, kind: input, shape index: {}]   ;;  %s2275_s2 = inlined_call_operand.vmem [shape: f32[4,1,128], index: 2, kind: input, shape index: {}]   ;;  %s2276_s3 = inlined_call_operand.hbm [shape: f32[1,512], index: 3, kind: input, shape index: {}]   ;;  %s2277_s4 = inlined_call_operand.vmem [shape: f32[1,512], index: 4, kind: input, shape index: {}]   ;;  %s2278_s5 = inlined_call_operand.<no memory space> [shape: f32[1,1], index: 5, kind: input, shape index: {}]   ;;  %s2279_s6 = inlined_call_operand.hbm [shape: f32[512,512], index: 6, kind: output, shape index: {}]  }
   0x1   :  { %15 = vsyncpa [#allocation5 + $0x1], 0 }
   0x2   :  { %16 = vsyncpa [#allocation8], 0 }
   0x3   :  { %17 = vsyncpa [#allocation6], 0 }
   0x4   :  { %19 = vsyncpa [#allocation6 + $0x1], 0  ;;  %s1866_s21 = smov 0   ;;  %s1868_s22 = smov 0  }
   0x5   :  { %s1870_s23 = smov 0   ;;  %s1872_s24 = smov 0  }
   0x6 LB: > { %s1887_s4 = sadd.s32 4294967295, %s1819_s24   ;;  %s1215_s5 = sadd.s32 4294967294, %s1819_s24   ;;  %s1819_s24 = sphi %s1872_s24, %s2300_s24   ;;  %s1815_s23 = sphi %s1870_s23, %s2299_s23   ;;  %s1811_s22 = sphi %s1868_s22, %s2298_s22   ;;  %s1807_s21 = sphi %s1866_s21, %s2297_s21  }
   0x7   : > { %p45_p0 = scmp.ne.s32.totalorder %s1811_s22, %s1807_s21  ;;  %p2280_p1 = scmp.eq.s32.totalorder %s1887_s4, 0 }
   0x8   : > { %p180_p3 = scmp.eq.s32.totalorder %s1215_s5, 3  ;;  %p1216_p5 = scmp.ge.s32.totalorder %s1819_s24, 1 }
   0x9   : > { %p1896_p4 = por %p2280_p1, %p45_p0  ;;  %p187_p7 = scmp.lt.s32.totalorder %s1819_s24, 5 }
   0xa   : > { %p1901_p6 = por %p180_p3, %p45_p0  ;;  %s1821_s28 = smov [#allocation7]  }
   0xb   : > { %s2284_s25 = scalar_select %p1896_p4, 1, 0 }
   0xc   : > { %s2285_s26 = scalar_select %p1901_p6, 1, 0 }
   0xd   : > { %p1906_p8 = pnand %p1216_p5, %p187_p7  ;;  %s199_s29 = sshll.u32 %s1821_s28, 4  ;;  %s200_s29 = int_to_ptr.vmem [resolvable:$true] %s199_s29 }
   0xe   : > { %s1822_s7 = smov [#allocation9]   ;;  %s1682_s9 = scalar_lea.vmem %s200_s29, 8192 }
   0xf   : > { %s2286_s27 = scalar_select %p1906_p8, 1, 0 }
  0x10   : > { %p1610_p9 = pneg %p1906_p8  ;;  %s216_s8 = sshll.u32 %s1822_s7, 4  ;;  %s217_s8 = int_to_ptr.vmem [resolvable:$true] %s216_s8 }
  0x11   : > { %p1683_p12 = scmp.ne.s32.totalorder %s200_s29, %s1682_s9  ;;  %p1690_p3 = scmp.lt.s32.totalorder %s200_s29, %s200_s29 }
  0x12   : > { %p1914_p10 = pnand %p1610_p9, %p2280_p1  ;;  %p1691_p5 = scmp.lt.s32.totalorder %s1682_s9, %s1682_s9 }
  0x14   : > { %p1673_p11 = pneg %p1914_p10  ;;  %p1692_p7 = por %p1691_p5, %p1690_p3 }
  0x16   : > { %p1685_p13 = pnand %p1683_p12, %p1673_p11 }
  0x18   : > { %p1686_p0 = pneg %p1685_p13 }
  0x1a   : > { %p1693_p9 = pnand %p1692_p7, %p1686_p0 }
  0x1c   : > { %1696 = shalt.err (!%p1693_p9)
}
  0x1d   : > { %s1823_s10 = smov 128   ;;  %s1824_s11 = smov 8  }
  0x1e   : > { %1613 = dma.hbm_to_vmem [thread:$0]  (!%p1914_p10), %s2274_s1, 8192, %s200_s29, [#allocation8], %s1823_s10, %s1823_s10, %s1824_s11  }
  0x1f   : > { %s1708_s14 = scalar_lea.vmem %s217_s8, 64  ;;  %p1716_p2 = scmp.lt.s32.totalorder %s217_s8, %s217_s8 }
  0x20   : > { %p1709_p1 = scmp.ne.s32.totalorder %s217_s8, %s1708_s14  ;;  %p1717_p6 = scmp.lt.s32.totalorder %s1708_s14, %s1708_s14 }
  0x22   : > { %p1711_p12 = pnand %p1709_p1, %p1673_p11  ;;  %p1718_p3 = por %p1717_p6, %p1716_p2 }
  0x24   : > { %p1712_p13 = pneg %p1711_p12 }
  0x26   : > { %p1719_p0 = pnand %p1718_p3, %p1712_p13 }
  0x28   : > { %1722 = shalt.err (!%p1719_p0)
}
  0x29   : > { %1616 = dma.hbm_to_vmem [thread:$0]  (!%p1914_p10), %s2276_s3, 64, %s217_s8, [#allocation8]  }
  0x2a   : > { %s1937_s17 = sadd.s32 1, %s1819_s24   ;;  %s32_s18 = sadd.s32 1, %s1815_s23 }
  0x2b   : > { %s29_s19 = ssub.s32 %s1819_s24, %s1937_s17  ;;  %p39_p1 = scmp.ne.s32.totalorder %s1815_s23, %s1811_s22 }
  0x2c   : > { %p30_p2 = scmp.eq.s32.totalorder %s29_s19, 0  ;;  %p40_p6 = scmp.eq.s32.totalorder %s1819_s24, 0 }
  0x2d   : > { %p2288_p11 = scmp.eq.s32.totalorder %s1887_s4, 3  ;;  %p1627_p7 = scmp.lt.s32.totalorder %s1819_s24, 4 }
  0x2e   : > { %s1953_s5 = scalar_select %p30_p2, %s1815_s23, %s32_s18  }
  0x2f   : > { %p1947_p5 = por %p2288_p11, %p39_p1  ;;  %p41_p9 = por %p40_p6, %p39_p1 }
  0x30   : > { %s233_s28 = sand.u32 1, %s1815_s23   ;;  %s1243_s30 = sshll.u32 %s1819_s24, 13 }
  0x31   : > { %s2289_s20 = scalar_select %p1947_p5, 1, 0 }
  0x32   : > { %s1220_s29 = sshll.u32 %s233_s28, 9  ;;  %s1960_s9 = scalar_lea.hbm %s2273_s0, %s1243_s30 }
  0x33   : > { %s237_s10 = scalar_lea.vmem [#allocation4], %s1220_s29  ;;  %p1964_p10 = pnand %p1627_p7, %p41_p9 }
  0x34   : > { %s245_s11 = sshll.u32 %s237_s10, 4  ;;  %s1968_s13 = scalar_lea.sflag [#allocation5], %s233_s28  ;;  %s1962_s11 = int_to_ptr.vmem [resolvable:$true] %s245_s11 }
  0x35   : > { %s1723_s14 = scalar_lea.hbm %s1960_s9, 8192  ;;  %p1725_p13 = pneg %p1964_p10 }
  0x36   : > { %p1724_p12 = scmp.ne.s32.totalorder %s1960_s9, %s1723_s14  ;;  %s1728_s18 = scalar_lea.hbm %s2273_s0, 32768 }
  0x37   : > { %p1729_p1 = scmp.lt.s32.totalorder %s1960_s9, %s2273_s0  ;;  %p1730_p2 = scmp.lt.s32.totalorder %s1728_s18, %s1723_s14 }
  0x38   : > { %p1726_p3 = pnand %p1725_p13, %p1724_p12 }
  0x39   : > { %p1731_p6 = por %p1730_p2, %p1729_p1 }
  0x3a   : > { %p1727_p0 = pneg %p1726_p3 }
  0x3c   : > { %p1732_p11 = pnand %p1731_p6, %p1727_p0 }
  0x3e   : > { %1735 = shalt.err (!%p1732_p11)
}
  0x3f   : > { %s1736_s28 = scalar_lea.vmem %s1962_s11, 8192  ;;  %s1825_s30 = smov [#allocation4]  }
  0x40   : > { %p1737_p7 = scmp.ne.s32.totalorder %s1962_s11, %s1736_s28  ;;  %s1741_s7 = sshll.u32 %s1825_s30, 4  ;;  %s1742_s7 = int_to_ptr.vmem [resolvable:$false] %s1741_s7 }
  0x41   : > { %s1743_s8 = scalar_lea.vmem %s1742_s7, 16384  ;;  %p1744_p3 = scmp.lt.s32.totalorder %s1962_s11, %s1742_s7 }
  0x42   : > { %p1739_p9 = pnand %p1737_p7, %p1725_p13  ;;  %p1745_p5 = scmp.lt.s32.totalorder %s1743_s8, %s1736_s28 }
  0x44   : > { %p1740_p12 = pneg %p1739_p9  ;;  %p1746_p4 = por %p1745_p5, %p1744_p3 }
  0x46   : > { %p1747_p8 = pnand %p1746_p4, %p1740_p12 }
  0x48   : > { %1750 = shalt.err (!%p1747_p8)
}
  0x49   : > { %s1826_s10 = smov 512   ;;  %s1827_s14 = smov 32  }
  0x4a   : > { %1620 = dma.hbm_to_vmem [thread:$0]  (!%p1964_p10), %s1960_s9, 8192, %s1962_s11, %s1968_s13, %s1826_s10, %s1826_s10, %s1827_s14  }
  0x4b   : > { %p2291_p13 = scmp.ne.s32.totalorder %s2286_s27, 0 }
  0x4c   : > { %s1992_s15 = sand.u32 (!%p2291_p13), 1, %s1811_s22   ;;  %p2292_p4 = scmp.ne.s32.totalorder (!%p2291_p13), %s2284_s25, 0 }
  0x4d   : > { %257 = sbr.rel (%p2291_p13) target bundleno = 408 (0x198), region = 44  ;;  %s1225_s16 = sshll.u32 (!%p2291_p13), %s1992_s15, 9 }
  0x4e   : > { %s260_s18 = scalar_lea.sflag (!%p2291_p13), [#allocation5], %s1992_s15  ;;  %s1998_s19 = scalar_lea.vmem (!%p2291_p13), [#allocation4], %s1225_s16 }
  0x52   : > { %1794 = dma.done.wait (%p2292_p4), %s260_s18, 8192  }
  0x53   : > { %1796 = vsyncadd (%p2292_p4), %s260_s18, 4294959104  ;;  %p2293_p8 = scmp.eq.s32.totalorder %s1887_s4, 0 }
  0x55   : > { %1798 = dma.done.wait (%p2293_p8), [#allocation8], 8256   ;;  %p2294_p5 = pmov %p2293_p8 }
  0x56   : > { %v333_v0 = vld [vmem:[#allocation7 + $0x78] sm:$0xff]  ;;  %v332_v2 = vld [vmem:[#allocation7 + $0x70] sm:$0xff]  ;;  %v331_v4 = vld [vmem:[#allocation7 + $0x68] sm:$0xff]  ;;  %s2086_s12 = scalar_lea.vmem [#allocation10], %s1225_s16  ;;  %s1245_s7 = sshll.u32 %s1887_s4, 13 }
  0x57   : > { %1800 = vsyncadd (%p2294_p5), [#allocation8], 4294959040  ;;  %v534_v1 = vld [vmem:[#allocation7 + $0xf8] sm:$0xff]  ;;  %1374 = vmatprep.subr.mxu0 %v333_v0  ;;  %v533_v3 = vld [vmem:[#allocation7 + $0xf0] sm:$0xff]  ;;  %s1123_s8 = sshll.u32 %s2086_s12, 4  ;;  %s2223_s16 = scalar_lea.hbm %s2279_s6, %s1245_s7  ;;  %s2225_s8 = int_to_ptr.vmem [resolvable:$true] %s1123_s8 }
  0x58   : > { %1430 = vmatprep.subr.mxu1 %v534_v1  ;;  %1375 = vmatpush3.msra.mxu0 %v333_v0  ;;  %v532_v5 = vld [vmem:[#allocation7 + $0xe8] sm:$0xff]  ;;  %v330_v6 = vld [vmem:[#allocation7 + $0x60] sm:$0xff]  ;;  %v329_v8 = vld [vmem:[#allocation7 + $0x58] sm:$0xff]  ;;  %s1109_s4 = scalar_lea.sflag [#allocation6], %s1992_s15  ;;  %s1751_s18 = scalar_lea.vmem %s2225_s8, 8192 }
  0x59   : > { %1431 = vmatpush3.msra.mxu1 %v534_v1  ;;  %1376 = vmatprep.subr.mxu0 %v332_v2  ;;  %v531_v7 = vld [vmem:[#allocation7 + $0xe0] sm:$0xff]  ;;  %v530_v9 = vld [vmem:[#allocation7 + $0xd8] sm:$0xff]  ;;  %v328_v10 = vld [vmem:[#allocation7 + $0x50] sm:$0xff]  ;;  %p1752_p10 = scmp.ne.s32.totalorder %s2225_s8, %s1751_s18  ;;  %p2295_p0 = scmp.ne.s32.totalorder %s2289_s20, 0 }
  0x5a   : > { %1432 = vmatprep.subr.mxu1 %v533_v3  ;;  %1377 = vmatpush3.msra.mxu0 %v332_v2  ;;  %v529_v11 = vld [vmem:[#allocation7 + $0xd0] sm:$0xff]  ;;  %v327_v12 = vld [vmem:[#allocation7 + $0x48] sm:$0xff]  ;;  %v326_v14 = vld [vmem:[#allocation7 + $0x40] sm:$0xff] }
  0x5b   : > { %1433 = vmatpush3.msra.mxu1 %v533_v3  ;;  %1378 = vmatprep.subr.mxu0 %v331_v4  ;;  %v528_v13 = vld [vmem:[#allocation7 + $0xc8] sm:$0xff]  ;;  %v527_v15 = vld [vmem:[#allocation7 + $0xc0] sm:$0xff]  ;;  %v325_v16 = vld [vmem:[#allocation7 + $0x38] sm:$0xff]  ;;  %p1753_p1 = pnand %p1752_p10, %p2295_p0 }
  0x5c   : > { %1434 = vmatprep.subr.mxu1 %v532_v5  ;;  %1379 = vmatpush3.msra.mxu0 %v331_v4  ;;  %v526_v17 = vld [vmem:[#allocation7 + $0xb8] sm:$0xff]  ;;  %v324_v18 = vld [vmem:[#allocation7 + $0x30] sm:$0xff]  ;;  %v323_v20 = vld [vmem:[#allocation7 + $0x28] sm:$0xff] }
  0x5d   : > { %1435 = vmatpush3.msra.mxu1 %v532_v5  ;;  %1380 = vmatprep.subr.mxu0 %v330_v6  ;;  %v525_v19 = vld [vmem:[#allocation7 + $0xb0] sm:$0xff]  ;;  %v524_v21 = vld [vmem:[#allocation7 + $0xa8] sm:$0xff]  ;;  %v322_v22 = vld [vmem:[#allocation7 + $0x20] sm:$0xff]  ;;  %p1754_p2 = pneg %p1753_p1 }
  0x5e   : > { %1436 = vmatprep.subr.mxu1 %v531_v7  ;;  %1381 = vmatpush3.msra.mxu0 %v330_v6  ;;  %v523_v23 = vld [vmem:[#allocation7 + $0xa0] sm:$0xff]  ;;  %v321_v24 = vld [vmem:[#allocation7 + $0x18] sm:$0xff]  ;;  %v320_v26 = vld [vmem:[#allocation7 + $0x10] sm:$0xff] }
  0x5f   : > { %1437 = vmatpush3.msra.mxu1 %v531_v7  ;;  %1382 = vmatprep.subr.mxu0 %v329_v8  ;;  %v522_v25 = vld [vmem:[#allocation7 + $0x98] sm:$0xff]  ;;  %v521_v27 = vld [vmem:[#allocation7 + $0x90] sm:$0xff]  ;;  %v319_v28 = vld [vmem:[#allocation7 + $0x8] sm:$0xff] }
  0x60   : > { %1438 = vmatprep.subr.mxu1 %v530_v9  ;;  %1383 = vmatpush3.msra.mxu0 %v329_v8  ;;  %v520_v29 = vld [vmem:[#allocation7 + $0x88] sm:$0xff]  ;;  %v318_v30 = vld [vmem:[#allocation7] sm:$0xff]  ;;  %v736_v36 = vld [vmem:[#allocation7 + $0x178] sm:$0xff] }
  0x61   : > { %1439 = vmatpush3.msra.mxu1 %v530_v9  ;;  %1384 = vmatprep.subr.mxu0 %v328_v10  ;;  %v519_v31 = vld [vmem:[#allocation7 + $0x80] sm:$0xff]  ;;  %v502_v33 = vld [vmem:[%s1998_s19 + $0x8] sm:$0xff]  ;;  %v938_v37 = vld [vmem:[#allocation7 + $0x1f8] sm:$0xff] }
  0x62   : > { %1440 = vmatprep.subr.mxu1 %v529_v11  ;;  %1385 = vmatpush3.msra.mxu0 %v328_v10  ;;  %v302_v32 = vld [vmem:[%s1998_s19] sm:$0xff]  ;;  %v503_v35 = vld [vmem:[%s1998_s19 + $0x28] sm:$0xff]  ;;  %v735_v38 = vld [vmem:[#allocation7 + $0x170] sm:$0xff] }
  0x63   : > { %1441 = vmatpush3.msra.mxu1 %v529_v11  ;;  %1386 = vmatprep.subr.mxu0 %v327_v12  ;;  %v303_v34 = vld [vmem:[%s1998_s19 + $0x20] sm:$0xff]  ;;  %v937_v39 = vld [vmem:[#allocation7 + $0x1f0] sm:$0xff]  ;;  %v504_v41 = vld [vmem:[%s1998_s19 + $0x48] sm:$0xff] }
  0x64   : > { %1442 = vmatprep.subr.mxu1 %v528_v13  ;;  %1387 = vmatpush3.msra.mxu0 %v327_v12  ;;  %v304_v40 = vld [vmem:[%s1998_s19 + $0x40] sm:$0xff]  ;;  %v505_v43 = vld [vmem:[%s1998_s19 + $0x68] sm:$0xff]  ;;  %v732_v52 = vld [vmem:[#allocation7 + $0x158] sm:$0xff] }
  0x65   : > { %1443 = vmatpush3.msra.mxu1 %v528_v13  ;;  %1388 = vmatprep.subr.mxu0 %v326_v14  ;;  %v305_v42 = vld [vmem:[%s1998_s19 + $0x60] sm:$0xff]  ;;  %v734_v44 = vld [vmem:[#allocation7 + $0x168] sm:$0xff]  ;;  %v934_v53 = vld [vmem:[#allocation7 + $0x1d8] sm:$0xff] }
  0x66   : > { %1444 = vmatprep.subr.mxu1 %v527_v15  ;;  %1389 = vmatpush3.msra.mxu0 %v326_v14  ;;  %v936_v45 = vld [vmem:[#allocation7 + $0x1e8] sm:$0xff]  ;;  %v733_v46 = vld [vmem:[#allocation7 + $0x160] sm:$0xff]  ;;  %v731_v54 = vld [vmem:[#allocation7 + $0x150] sm:$0xff] }
  0x67   : > { %1445 = vmatpush3.msra.mxu1 %v527_v15  ;;  %1390 = vmatprep.subr.mxu0 %v325_v16  ;;  %v935_v47 = vld [vmem:[#allocation7 + $0x1e0] sm:$0xff]  ;;  %v506_v49 = vld [vmem:[%s1998_s19 + $0x88] sm:$0xff]  ;;  %v933_v55 = vld [vmem:[#allocation7 + $0x1d0] sm:$0xff] }
  0x68   : > { %1446 = vmatprep.subr.mxu1 %v526_v17  ;;  %1391 = vmatpush3.msra.mxu0 %v325_v16  ;;  %v306_v48 = vld [vmem:[%s1998_s19 + $0x80] sm:$0xff]  ;;  %v507_v51 = vld [vmem:[%s1998_s19 + $0xa8] sm:$0xff]  ;;  %v728_v4 = vld [vmem:[#allocation7 + $0x138] sm:$0xff] }
  0x69   : > { %1447 = vmatpush3.msra.mxu1 %v526_v17  ;;  %1392 = vmatprep.subr.mxu0 %v324_v18  ;;  %v307_v50 = vld [vmem:[%s1998_s19 + $0xa0] sm:$0xff]  ;;  %v508_v57 = vld [vmem:[%s1998_s19 + $0xc8] sm:$0xff]  ;;  %v930_v5 = vld [vmem:[#allocation7 + $0x1b8] sm:$0xff] }
  0x6a   : > { %1448 = vmatprep.subr.mxu1 %v525_v19  ;;  %1393 = vmatpush3.msra.mxu0 %v324_v18  ;;  %v308_v56 = vld [vmem:[%s1998_s19 + $0xc0] sm:$0xff]  ;;  %v509_v59 = vld [vmem:[%s1998_s19 + $0xe8] sm:$0xff]  ;;  %v727_v6 = vld [vmem:[#allocation7 + $0x130] sm:$0xff] }
  0x6b   : > { %1449 = vmatpush3.msra.mxu1 %v525_v19  ;;  %1394 = vmatprep.subr.mxu0 %v323_v20  ;;  %v309_v58 = vld [vmem:[%s1998_s19 + $0xe0] sm:$0xff]  ;;  %v730_v60 = vld [vmem:[#allocation7 + $0x148] sm:$0xff]  ;;  %v929_v7 = vld [vmem:[#allocation7 + $0x1b0] sm:$0xff] }
  0x6c   : > { %1450 = vmatprep.subr.mxu1 %v524_v21  ;;  %1395 = vmatpush3.msra.mxu0 %v323_v20  ;;  %v932_v61 = vld [vmem:[#allocation7 + $0x1c8] sm:$0xff]  ;;  %v729_v62 = vld [vmem:[#allocation7 + $0x140] sm:$0xff]  ;;  %v724_v20 = vld [vmem:[#allocation7 + $0x118] sm:$0xff] }
  0x6d   : > { %1451 = vmatpush3.msra.mxu1 %v524_v21  ;;  %1396 = vmatprep.subr.mxu0 %v322_v22  ;;  %v931_v63 = vld [vmem:[#allocation7 + $0x1c0] sm:$0xff]  ;;  %v510_v1 = vld [vmem:[%s1998_s19 + $0x108] sm:$0xff]  ;;  %v926_v21 = vld [vmem:[#allocation7 + $0x198] sm:$0xff] }
  0x6e   : > { %1452 = vmatprep.subr.mxu1 %v523_v23  ;;  %1397 = vmatpush3.msra.mxu0 %v322_v22  ;;  %v310_v0 = vld [vmem:[%s1998_s19 + $0x100] sm:$0xff]  ;;  %v511_v3 = vld [vmem:[%s1998_s19 + $0x128] sm:$0xff]  ;;  %v723_v22 = vld [vmem:[#allocation7 + $0x110] sm:$0xff] }
  0x6f   : > { %1453 = vmatpush3.msra.mxu1 %v523_v23  ;;  %1398 = vmatprep.subr.mxu0 %v321_v24  ;;  %v311_v2 = vld [vmem:[%s1998_s19 + $0x120] sm:$0xff]  ;;  %v512_v9 = vld [vmem:[%s1998_s19 + $0x148] sm:$0xff]  ;;  %v925_v23 = vld [vmem:[#allocation7 + $0x190] sm:$0xff] }
  0x70   : > { %1454 = vmatprep.subr.mxu1 %v522_v25  ;;  %1399 = vmatpush3.msra.mxu0 %v321_v24  ;;  %v312_v8 = vld [vmem:[%s1998_s19 + $0x140] sm:$0xff]  ;;  %v513_v11 = vld [vmem:[%s1998_s19 + $0x168] sm:$0xff] }
  0x71   : > { %1455 = vmatpush3.msra.mxu1 %v522_v25  ;;  %1400 = vmatprep.subr.mxu0 %v320_v26  ;;  %v313_v10 = vld [vmem:[%s1998_s19 + $0x160] sm:$0xff]  ;;  %v726_v12 = vld [vmem:[#allocation7 + $0x128] sm:$0xff] }
  0x72   : > { %1456 = vmatprep.subr.mxu1 %v521_v27  ;;  %1401 = vmatpush3.msra.mxu0 %v320_v26  ;;  %v928_v13 = vld [vmem:[#allocation7 + $0x1a8] sm:$0xff]  ;;  %v725_v14 = vld [vmem:[#allocation7 + $0x120] sm:$0xff] }
  0x73   : > { %1457 = vmatpush3.msra.mxu1 %v521_v27  ;;  %1402 = vmatprep.subr.mxu0 %v319_v28  ;;  %v927_v15 = vld [vmem:[#allocation7 + $0x1a0] sm:$0xff]  ;;  %v514_v17 = vld [vmem:[%s1998_s19 + $0x188] sm:$0xff] }
  0x74   : > { %1458 = vmatprep.subr.mxu1 %v520_v29  ;;  %1403 = vmatpush3.msra.mxu0 %v319_v28  ;;  %v314_v16 = vld [vmem:[%s1998_s19 + $0x180] sm:$0xff]  ;;  %v515_v19 = vld [vmem:[%s1998_s19 + $0x1a8] sm:$0xff] }
  0x75   : > { %1459 = vmatpush3.msra.mxu1 %v520_v29  ;;  %1404 = vmatprep.subr.mxu0 %v318_v30  ;;  %v315_v18 = vld [vmem:[%s1998_s19 + $0x1a0] sm:$0xff]  ;;  %v516_v25 = vld [vmem:[%s1998_s19 + $0x1c8] sm:$0xff] }
  0x76   : > { %1460 = vmatprep.subr.mxu1 %v519_v31  ;;  %1405 = vmatpush3.msra.mxu0 %v318_v30  ;;  %v316_v24 = vld [vmem:[%s1998_s19 + $0x1c0] sm:$0xff]  ;;  %v517_v27 = vld [vmem:[%s1998_s19 + $0x1e8] sm:$0xff] }
  0x77   : > { %1406 = vmatprep.mubr.f32.mxu0 %v302_v32  ;;  %1461 = vmatpush3.msra.mxu1 %v519_v31  ;;  %v317_v26 = vld [vmem:[%s1998_s19 + $0x1e0] sm:$0xff]  ;;  %v722_v28 = vld [vmem:[#allocation7 + $0x108] sm:$0xff]  ;;  %v704_v32 = vld [vmem:[%s1998_s19 + $0x10] sm:$0xff] }
  0x78   : > { %1462 = vmatprep.mubr.f32.mxu1 %v502_v33  ;;  %1407 = vmatmul.mubr.f32.vlgmr.msra.gmra.mxu0 %v303_v34  ;;  %v924_v29 = vld [vmem:[#allocation7 + $0x188] sm:$0xff]  ;;  %v721_v30 = vld [vmem:[#allocation7 + $0x100] sm:$0xff]  ;;  %v906_v33 = vld [vmem:[%s1998_s19 + $0x18] sm:$0xff] }
  0x79   : > { %1463 = vmatmul.mubr.f32.vlgmr.msra.gmra.mxu1 %v503_v35  ;;  %1486 = vmatprep.subr.mxu0 %v736_v36  ;;  %v923_v31 = vld [vmem:[#allocation7 + $0x180] sm:$0xff]  ;;  %v705_v34 = vld [vmem:[%s1998_s19 + $0x30] sm:$0xff]  ;;  %v907_v35 = vld [vmem:[%s1998_s19 + $0x38] sm:$0xff] }
  0x7a   : > { %1542 = vmatprep.subr.mxu1 %v938_v37  ;;  %1487 = vmatpush3.msra.mxu0 %v736_v36  ;;  %v706_v36 = vld [vmem:[%s1998_s19 + $0x50] sm:$0xff] }
  0x7b   : > { %1543 = vmatpush3.msra.mxu1 %v938_v37  ;;  %1488 = vmatprep.subr.mxu0 %v735_v38  ;;  %v908_v37 = vld [vmem:[%s1998_s19 + $0x58] sm:$0xff] }
  0x7c   : > { %1544 = vmatprep.subr.mxu1 %v937_v39  ;;  %1409 = vmatprep.mubr.f32.mxu0 %v304_v40  ;;  %v708_v40 = vld [vmem:[%s1998_s19 + $0x90] sm:$0xff] }
  0x7d   : > { %1465 = vmatprep.mubr.f32.mxu1 %v504_v41  ;;  %1489 = vmatpush3.msra.mxu0 %v735_v38  ;;  %v707_v38 = vld [vmem:[%s1998_s19 + $0x70] sm:$0xff]  ;;  %v910_v41 = vld [vmem:[%s1998_s19 + $0x98] sm:$0xff] }
  0x7e   : > { %1545 = vmatpush3.msra.mxu1 %v937_v39  ;;  %1410 = vmatmul.mubr.f32.gmra.mxu0 %v305_v42  ;;  %v909_v39 = vld [vmem:[%s1998_s19 + $0x78] sm:$0xff]  ;;  %v709_v42 = vld [vmem:[%s1998_s19 + $0xb0] sm:$0xff] }
  0x7f   : > { %1466 = vmatmul.mubr.f32.gmra.mxu1 %v505_v43  ;;  %1490 = vmatprep.subr.mxu0 %v734_v44  ;;  %v911_v43 = vld [vmem:[%s1998_s19 + $0xb8] sm:$0xff] }
  0x80   : > { %1546 = vmatprep.subr.mxu1 %v936_v45  ;;  %1491 = vmatpush3.msra.mxu0 %v734_v44  ;;  %v710_v44 = vld [vmem:[%s1998_s19 + $0xd0] sm:$0xff] }
  0x81   : > { %1547 = vmatpush3.msra.mxu1 %v936_v45  ;;  %1492 = vmatprep.subr.mxu0 %v733_v46  ;;  %v912_v45 = vld [vmem:[%s1998_s19 + $0xd8] sm:$0xff] }
  0x82   : > { %1548 = vmatprep.subr.mxu1 %v935_v47  ;;  %1412 = vmatprep.mubr.f32.mxu0 %v306_v48  ;;  %v712_v48 = vld [vmem:[%s1998_s19 + $0x110] sm:$0xff] }
  0x83   : > { %1468 = vmatprep.mubr.f32.mxu1 %v506_v49  ;;  %1493 = vmatpush3.msra.mxu0 %v733_v46  ;;  %v711_v46 = vld [vmem:[%s1998_s19 + $0xf0] sm:$0xff]  ;;  %v914_v49 = vld [vmem:[%s1998_s19 + $0x118] sm:$0xff] }
  0x84   : > { %1549 = vmatpush3.msra.mxu1 %v935_v47  ;;  %1413 = vmatmul.mubr.f32.gmra.mxu0 %v307_v50  ;;  %v913_v47 = vld [vmem:[%s1998_s19 + $0xf8] sm:$0xff]  ;;  %v713_v50 = vld [vmem:[%s1998_s19 + $0x130] sm:$0xff] }
  0x85   : > { %1469 = vmatmul.mubr.f32.gmra.mxu1 %v507_v51  ;;  %1494 = vmatprep.subr.mxu0 %v732_v52  ;;  %v915_v51 = vld [vmem:[%s1998_s19 + $0x138] sm:$0xff] }
  0x86   : > { %1550 = vmatprep.subr.mxu1 %v934_v53  ;;  %1495 = vmatpush3.msra.mxu0 %v732_v52  ;;  %v714_v52 = vld [vmem:[%s1998_s19 + $0x150] sm:$0xff] }
  0x87   : > { %1551 = vmatpush3.msra.mxu1 %v934_v53  ;;  %1496 = vmatprep.subr.mxu0 %v731_v54  ;;  %v916_v53 = vld [vmem:[%s1998_s19 + $0x158] sm:$0xff] }
  0x88   : > { %1552 = vmatprep.subr.mxu1 %v933_v55  ;;  %1415 = vmatprep.mubr.f32.mxu0 %v308_v56  ;;  %v716_v56 = vld [vmem:[%s1998_s19 + $0x190] sm:$0xff] }
  0x89   : > { %1471 = vmatprep.mubr.f32.mxu1 %v508_v57  ;;  %1497 = vmatpush3.msra.mxu0 %v731_v54  ;;  %v715_v54 = vld [vmem:[%s1998_s19 + $0x170] sm:$0xff]  ;;  %v918_v57 = vld [vmem:[%s1998_s19 + $0x198] sm:$0xff] }
  0x8a   : > { %1553 = vmatpush3.msra.mxu1 %v933_v55  ;;  %1416 = vmatmul.mubr.f32.gmra.mxu0 %v309_v58  ;;  %v917_v55 = vld [vmem:[%s1998_s19 + $0x178] sm:$0xff]  ;;  %v717_v58 = vld [vmem:[%s1998_s19 + $0x1b0] sm:$0xff] }
  0x8b   : > { %1472 = vmatmul.mubr.f32.gmra.mxu1 %v509_v59  ;;  %1498 = vmatprep.subr.mxu0 %v730_v60  ;;  %v919_v59 = vld [vmem:[%s1998_s19 + $0x1b8] sm:$0xff] }
  0x8c   : > { %1554 = vmatprep.subr.mxu1 %v932_v61  ;;  %1499 = vmatpush3.msra.mxu0 %v730_v60  ;;  %v718_v60 = vld [vmem:[%s1998_s19 + $0x1d0] sm:$0xff] }
  0x8d   : > { %1555 = vmatpush3.msra.mxu1 %v932_v61  ;;  %1500 = vmatprep.subr.mxu0 %v729_v62  ;;  %v920_v61 = vld [vmem:[%s1998_s19 + $0x1d8] sm:$0xff] }
  0x8e   : > { %1556 = vmatprep.subr.mxu1 %v931_v63  ;;  %1418 = vmatprep.mubr.f32.mxu0 %v310_v0  ;;  %v2075_v0 = vld [vmem:[%s2275_s2] ss:$0 sm:$0xff] }
  0x8f   : > { %1474 = vmatprep.mubr.f32.mxu1 %v510_v1  ;;  %1501 = vmatpush3.msra.mxu0 %v729_v62  ;;  %v719_v62 = vld [vmem:[%s1998_s19 + $0x1f0] sm:$0xff]  ;;  %v2080_v1 = vld [vmem:[%s2275_s2 + $0x1] ss:$0 sm:$0xff] }
  0x90   : > { %1557 = vmatpush3.msra.mxu1 %v931_v63  ;;  %1419 = vmatmul.mubr.f32.gmra.mxu0 %v311_v2  ;;  %v921_v63 = vld [vmem:[%s1998_s19 + $0x1f8] sm:$0xff]  ;;  %s1828_s19 = smov [#allocation10]  }
  0x91   : > { %1475 = vmatmul.mubr.f32.gmra.mxu1 %v511_v3  ;;  %1502 = vmatprep.subr.mxu0 %v728_v4  ;;  %s1755_s25 = sshll.u32 %s1828_s19, 4  ;;  %s1756_s25 = int_to_ptr.vmem [resolvable:$false] %s1755_s25 }
  0x92   : > { %1558 = vmatprep.subr.mxu1 %v930_v5  ;;  %1503 = vmatpush3.msra.mxu0 %v728_v4  ;;  %s1757_s27 = scalar_lea.vmem %s1756_s25, 16384  ;;  %p1758_p6 = scmp.lt.s32.totalorder %s2225_s8, %s1756_s25 }
  0x93   : > { %1559 = vmatpush3.msra.mxu1 %v930_v5  ;;  %1504 = vmatprep.subr.mxu0 %v727_v6  ;;  %p1759_p11 = scmp.lt.s32.totalorder %s1757_s27, %s1751_s18 }
  0x94   : > { %1560 = vmatprep.subr.mxu1 %v929_v7  ;;  %1421 = vmatprep.mubr.f32.mxu0 %v312_v8 }
  0x95   : > { %1477 = vmatprep.mubr.f32.mxu1 %v512_v9  ;;  %1505 = vmatpush3.msra.mxu0 %v727_v6  ;;  %p1760_p7 = por %p1759_p11, %p1758_p6 }
  0x96   : > { %1561 = vmatpush3.msra.mxu1 %v929_v7  ;;  %1422 = vmatmul.mubr.f32.gmra.mxu0 %v313_v10 }
  0x97   : > { %1478 = vmatmul.mubr.f32.gmra.mxu1 %v513_v11  ;;  %1506 = vmatprep.subr.mxu0 %v726_v12  ;;  %p1761_p9 = pnand %p1760_p7, %p1754_p2 }
  0x98   : > { %1562 = vmatprep.subr.mxu1 %v928_v13  ;;  %1507 = vmatpush3.msra.mxu0 %v726_v12 }
  0x99   : > { %1563 = vmatpush3.msra.mxu1 %v928_v13  ;;  %1508 = vmatprep.subr.mxu0 %v725_v14 }
  0x9a   : > { %1564 = vmatprep.subr.mxu1 %v927_v15  ;;  %1424 = vmatprep.mubr.f32.mxu0 %v314_v16 }
  0x9b   : > { %1480 = vmatprep.mubr.f32.mxu1 %v514_v17  ;;  %1509 = vmatpush3.msra.mxu0 %v725_v14 }
  0x9c   : > { %1565 = vmatpush3.msra.mxu1 %v927_v15  ;;  %1425 = vmatmul.mubr.f32.gmra.mxu0 %v315_v18 }
  0x9d   : > { %1481 = vmatmul.mubr.f32.gmra.mxu1 %v515_v19  ;;  %1510 = vmatprep.subr.mxu0 %v724_v20 }
  0x9e   : > { %1566 = vmatprep.subr.mxu1 %v926_v21  ;;  %1511 = vmatpush3.msra.mxu0 %v724_v20 }
  0x9f   : > { %1567 = vmatpush3.msra.mxu1 %v926_v21  ;;  %1512 = vmatprep.subr.mxu0 %v723_v22 }
  0xa0   : > { %1568 = vmatprep.subr.mxu1 %v925_v23  ;;  %1427 = vmatprep.mubr.f32.mxu0 %v316_v24 }
  0xa1   : > { %1483 = vmatprep.mubr.f32.mxu1 %v516_v25  ;;  %1513 = vmatpush3.msra.mxu0 %v723_v22 }
  0xa2   : > { %1569 = vmatpush3.msra.mxu1 %v925_v23  ;;  %1428 = vmatmul.mubr.f32.gmra.mxu0 %v317_v26 }
  0xa3   : > { %1484 = vmatmul.mubr.f32.gmra.mxu1 %v517_v27  ;;  %1514 = vmatprep.subr.mxu0 %v722_v28 }
  0xa4   : > { %1570 = vmatprep.subr.mxu1 %v924_v29  ;;  %1515 = vmatpush3.msra.mxu0 %v722_v28 }
  0xa5   : > { %1571 = vmatpush3.msra.mxu1 %v924_v29  ;;  %1516 = vmatprep.subr.mxu0 %v721_v30 }
  0xa6   : > { %1572 = vmatprep.subr.mxu1 %v923_v31  ;;  %1517 = vmatpush3.msra.mxu0 %v721_v30 }
  0xa7   : > { %1518 = vmatprep.mubr.f32.mxu0 %v704_v32  ;;  %1573 = vmatpush3.msra.mxu1 %v923_v31 }
  0xa8   : > { %1574 = vmatprep.mubr.f32.mxu1 %v906_v33  ;;  %1519 = vmatmul.mubr.f32.vlgmr.msra.gmra.mxu0 %v705_v34 }
  0xa9   : > { %1575 = vmatmul.mubr.f32.vlgmr.msra.gmra.mxu1 %v907_v35  ;;  %1521 = vmatprep.mubr.f32.mxu0 %v706_v36 }
  0xaa   : > { %1577 = vmatprep.mubr.f32.mxu1 %v908_v37 }
  0xac   : > { %1522 = vmatmul.mubr.f32.gmra.mxu0 %v707_v38 }
  0xad   : > { %1578 = vmatmul.mubr.f32.gmra.mxu1 %v909_v39  ;;  %1524 = vmatprep.mubr.f32.mxu0 %v708_v40 }
  0xae   : > { %1580 = vmatprep.mubr.f32.mxu1 %v910_v41 }
  0xb0   : > { %1525 = vmatmul.mubr.f32.gmra.mxu0 %v709_v42 }
  0xb1   : > { %1581 = vmatmul.mubr.f32.gmra.mxu1 %v911_v43  ;;  %1527 = vmatprep.mubr.f32.mxu0 %v710_v44 }
  0xb2   : > { %1583 = vmatprep.mubr.f32.mxu1 %v912_v45 }
  0xb4   : > { %1528 = vmatmul.mubr.f32.gmra.mxu0 %v711_v46 }
  0xb5   : > { %1584 = vmatmul.mubr.f32.gmra.mxu1 %v913_v47  ;;  %1530 = vmatprep.mubr.f32.mxu0 %v712_v48 }
  0xb6   : > { %1586 = vmatprep.mubr.f32.mxu1 %v914_v49 }
  0xb8   : > { %1531 = vmatmul.mubr.f32.gmra.mxu0 %v713_v50 }
  0xb9   : > { %1587 = vmatmul.mubr.f32.gmra.mxu1 %v915_v51  ;;  %1533 = vmatprep.mubr.f32.mxu0 %v714_v52 }
  0xba   : > { %1589 = vmatprep.mubr.f32.mxu1 %v916_v53 }
  0xbc   : > { %1534 = vmatmul.mubr.f32.gmra.mxu0 %v715_v54 }
  0xbd   : > { %1590 = vmatmul.mubr.f32.gmra.mxu1 %v917_v55  ;;  %1536 = vmatprep.mubr.f32.mxu0 %v716_v56 }
  0xbe   : > { %1592 = vmatprep.mubr.f32.mxu1 %v918_v57 }
  0xc0   : > { %1537 = vmatmul.mubr.f32.gmra.mxu0 %v717_v58 }
  0xc1   : > { %1593 = vmatmul.mubr.f32.gmra.mxu1 %v919_v59  ;;  %1539 = vmatprep.mubr.f32.mxu0 %v718_v60 }
  0xc2   : > { %1595 = vmatprep.mubr.f32.mxu1 %v920_v61 }
  0xc4   : > { %1540 = vmatmul.mubr.f32.gmra.mxu0 %v719_v62 }
  0xc5   : > { %1596 = vmatmul.mubr.f32.gmra.mxu1 %v921_v63 }
 0x138   : > { %v1408_v2 = vpop.f32.mrf.mxu0 }
 0x139   : > { %v1464_v3 = vpop.f32.mrf.mxu1  ;;  %v413_v4 = vadd.f32 %v1408_v2, %v2075_v0 }
 0x13a   : > { %v615_v5 = vadd.f32 %v1464_v3, %v2080_v1  ;;  %v407_v6 = vpop.f32.mrf.mxu0 }
 0x13b   : > { %v609_v7 = vpop.f32.mrf.mxu1  ;;  %487 = vst [vmem:[%s2086_s12 + $0x20] sm:$0xff] %v413_v4  ;;  %v408_v8 = vadd.f32 %v2075_v0, %v407_v6  ;;  %v2151_v4 = vld [vmem:[%s2275_s2 + $0x2] ss:$0 sm:$0xff] }
 0x13c   : > { %689 = vst [vmem:[%s2086_s12 + $0x28] sm:$0xff] %v615_v5  ;;  %v610_v9 = vadd.f32 %v2080_v1, %v609_v7  ;;  %v2156_v5 = vld [vmem:[%s2275_s2 + $0x3] ss:$0 sm:$0xff] }
 0x13d   : > { %486 = vst [vmem:[%s2086_s12] sm:$0xff] %v408_v8 }
 0x13e   : > { %688 = vst [vmem:[%s2086_s12 + $0x8] sm:$0xff] %v610_v9  ;;  %v1411_v10 = vpop.f32.mrf.mxu0 }
 0x13f   : > { %v1467_v11 = vpop.f32.mrf.mxu1  ;;  %v423_v12 = vadd.f32 %v1411_v10, %v2075_v0 }
 0x140   : > { %v625_v13 = vadd.f32 %v1467_v11, %v2080_v1  ;;  %v417_v14 = vpop.f32.mrf.mxu0 }
 0x141   : > { %v619_v15 = vpop.f32.mrf.mxu1  ;;  %489 = vst [vmem:[%s2086_s12 + $0x60] sm:$0xff] %v423_v12  ;;  %v418_v16 = vadd.f32 %v2075_v0, %v417_v14 }
 0x142   : > { %691 = vst [vmem:[%s2086_s12 + $0x68] sm:$0xff] %v625_v13  ;;  %v620_v17 = vadd.f32 %v2080_v1, %v619_v15 }
 0x143   : > { %488 = vst [vmem:[%s2086_s12 + $0x40] sm:$0xff] %v418_v16 }
 0x144   : > { %690 = vst [vmem:[%s2086_s12 + $0x48] sm:$0xff] %v620_v17  ;;  %v1414_v18 = vpop.f32.mrf.mxu0 }
 0x145   : > { %v1470_v19 = vpop.f32.mrf.mxu1  ;;  %v433_v20 = vadd.f32 %v1414_v18, %v2075_v0 }
 0x146   : > { %v635_v21 = vadd.f32 %v1470_v19, %v2080_v1  ;;  %v427_v22 = vpop.f32.mrf.mxu0 }
 0x147   : > { %v629_v23 = vpop.f32.mrf.mxu1  ;;  %491 = vst [vmem:[%s2086_s12 + $0xa0] sm:$0xff] %v433_v20  ;;  %v428_v24 = vadd.f32 %v2075_v0, %v427_v22 }
 0x148   : > { %693 = vst [vmem:[%s2086_s12 + $0xa8] sm:$0xff] %v635_v21  ;;  %v630_v25 = vadd.f32 %v2080_v1, %v629_v23 }
 0x149   : > { %490 = vst [vmem:[%s2086_s12 + $0x80] sm:$0xff] %v428_v24 }
 0x14a   : > { %692 = vst [vmem:[%s2086_s12 + $0x88] sm:$0xff] %v630_v25  ;;  %v1417_v26 = vpop.f32.mrf.mxu0 }
 0x14b   : > { %v1473_v27 = vpop.f32.mrf.mxu1  ;;  %v443_v28 = vadd.f32 %v1417_v26, %v2075_v0 }
 0x14c   : > { %v645_v29 = vadd.f32 %v1473_v27, %v2080_v1  ;;  %v437_v30 = vpop.f32.mrf.mxu0 }
 0x14d   : > { %v639_v31 = vpop.f32.mrf.mxu1  ;;  %493 = vst [vmem:[%s2086_s12 + $0xe0] sm:$0xff] %v443_v28  ;;  %v438_v32 = vadd.f32 %v2075_v0, %v437_v30 }
 0x14e   : > { %695 = vst [vmem:[%s2086_s12 + $0xe8] sm:$0xff] %v645_v29  ;;  %v640_v33 = vadd.f32 %v2080_v1, %v639_v31 }
 0x14f   : > { %492 = vst [vmem:[%s2086_s12 + $0xc0] sm:$0xff] %v438_v32 }
 0x150   : > { %694 = vst [vmem:[%s2086_s12 + $0xc8] sm:$0xff] %v640_v33  ;;  %v1420_v34 = vpop.f32.mrf.mxu0 }
 0x151   : > { %v1476_v35 = vpop.f32.mrf.mxu1  ;;  %v453_v36 = vadd.f32 %v1420_v34, %v2075_v0 }
 0x152   : > { %v655_v37 = vadd.f32 %v1476_v35, %v2080_v1  ;;  %v447_v38 = vpop.f32.mrf.mxu0 }
 0x153   : > { %v649_v39 = vpop.f32.mrf.mxu1  ;;  %495 = vst [vmem:[%s2086_s12 + $0x120] sm:$0xff] %v453_v36  ;;  %v448_v40 = vadd.f32 %v2075_v0, %v447_v38 }
 0x154   : > { %697 = vst [vmem:[%s2086_s12 + $0x128] sm:$0xff] %v655_v37  ;;  %v650_v41 = vadd.f32 %v2080_v1, %v649_v39 }
 0x155   : > { %494 = vst [vmem:[%s2086_s12 + $0x100] sm:$0xff] %v448_v40 }
 0x156   : > { %696 = vst [vmem:[%s2086_s12 + $0x108] sm:$0xff] %v650_v41  ;;  %v1423_v42 = vpop.f32.mrf.mxu0 }
 0x157   : > { %v1479_v43 = vpop.f32.mrf.mxu1  ;;  %v463_v44 = vadd.f32 %v1423_v42, %v2075_v0 }
 0x158   : > { %v665_v45 = vadd.f32 %v1479_v43, %v2080_v1  ;;  %v457_v46 = vpop.f32.mrf.mxu0 }
 0x159   : > { %v659_v47 = vpop.f32.mrf.mxu1  ;;  %497 = vst [vmem:[%s2086_s12 + $0x160] sm:$0xff] %v463_v44  ;;  %v458_v48 = vadd.f32 %v2075_v0, %v457_v46 }
 0x15a   : > { %699 = vst [vmem:[%s2086_s12 + $0x168] sm:$0xff] %v665_v45  ;;  %v660_v49 = vadd.f32 %v2080_v1, %v659_v47 }
 0x15b   : > { %496 = vst [vmem:[%s2086_s12 + $0x140] sm:$0xff] %v458_v48 }
 0x15c   : > { %698 = vst [vmem:[%s2086_s12 + $0x148] sm:$0xff] %v660_v49  ;;  %v1426_v50 = vpop.f32.mrf.mxu0 }
 0x15d   : > { %v1482_v51 = vpop.f32.mrf.mxu1  ;;  %v473_v52 = vadd.f32 %v1426_v50, %v2075_v0 }
 0x15e   : > { %v675_v53 = vadd.f32 %v1482_v51, %v2080_v1  ;;  %v467_v54 = vpop.f32.mrf.mxu0 }
 0x15f   : > { %v669_v55 = vpop.f32.mrf.mxu1  ;;  %499 = vst [vmem:[%s2086_s12 + $0x1a0] sm:$0xff] %v473_v52  ;;  %v468_v56 = vadd.f32 %v2075_v0, %v467_v54 }
 0x160   : > { %701 = vst [vmem:[%s2086_s12 + $0x1a8] sm:$0xff] %v675_v53  ;;  %v670_v57 = vadd.f32 %v2080_v1, %v669_v55 }
 0x161   : > { %498 = vst [vmem:[%s2086_s12 + $0x180] sm:$0xff] %v468_v56 }
 0x162   : > { %700 = vst [vmem:[%s2086_s12 + $0x188] sm:$0xff] %v670_v57  ;;  %v1429_v58 = vpop.f32.mrf.mxu0 }
 0x163   : > { %v1485_v59 = vpop.f32.mrf.mxu1  ;;  %v483_v60 = vadd.f32 %v1429_v58, %v2075_v0 }
 0x164   : > { %v685_v61 = vadd.f32 %v1485_v59, %v2080_v1  ;;  %v477_v62 = vpop.f32.mrf.mxu0 }
 0x165   : > { %v679_v63 = vpop.f32.mrf.mxu1  ;;  %501 = vst [vmem:[%s2086_s12 + $0x1e0] sm:$0xff] %v483_v60  ;;  %v478_v2 = vadd.f32 %v2075_v0, %v477_v62 }
 0x166   : > { %703 = vst [vmem:[%s2086_s12 + $0x1e8] sm:$0xff] %v685_v61  ;;  %v680_v3 = vadd.f32 %v2080_v1, %v679_v63 }
 0x167   : > { %500 = vst [vmem:[%s2086_s12 + $0x1c0] sm:$0xff] %v478_v2 }
 0x168   : > { %702 = vst [vmem:[%s2086_s12 + $0x1c8] sm:$0xff] %v680_v3  ;;  %v1520_v6 = vpop.f32.mrf.mxu0 }
 0x169   : > { %v1576_v7 = vpop.f32.mrf.mxu1  ;;  %v817_v0 = vadd.f32 %v1520_v6, %v2151_v4 }
 0x16a   : > { %v1019_v1 = vadd.f32 %v1576_v7, %v2156_v5  ;;  %v811_v8 = vpop.f32.mrf.mxu0 }
 0x16b   : > { %v1013_v9 = vpop.f32.mrf.mxu1  ;;  %891 = vst [vmem:[%s2086_s12 + $0x30] sm:$0xff] %v817_v0  ;;  %v812_v10 = vadd.f32 %v2151_v4, %v811_v8 }
 0x16c   : > { %1093 = vst [vmem:[%s2086_s12 + $0x38] sm:$0xff] %v1019_v1  ;;  %v1014_v11 = vadd.f32 %v2156_v5, %v1013_v9  ;;  %v1523_v12 = vpop.f32.mrf.mxu0 }
 0x16d   : > { %v1579_v13 = vpop.f32.mrf.mxu1  ;;  %890 = vst [vmem:[%s2086_s12 + $0x10] sm:$0xff] %v812_v10  ;;  %v827_v14 = vadd.f32 %v1523_v12, %v2151_v4 }
 0x16e   : > { %1092 = vst [vmem:[%s2086_s12 + $0x18] sm:$0xff] %v1014_v11  ;;  %v1029_v15 = vadd.f32 %v1579_v13, %v2156_v5  ;;  %v821_v16 = vpop.f32.mrf.mxu0 }
 0x16f   : > { %v1023_v17 = vpop.f32.mrf.mxu1  ;;  %893 = vst [vmem:[%s2086_s12 + $0x70] sm:$0xff] %v827_v14  ;;  %v822_v18 = vadd.f32 %v2151_v4, %v821_v16 }
 0x170   : > { %1095 = vst [vmem:[%s2086_s12 + $0x78] sm:$0xff] %v1029_v15  ;;  %v1024_v19 = vadd.f32 %v2156_v5, %v1023_v17  ;;  %v1526_v20 = vpop.f32.mrf.mxu0 }
 0x171   : > { %v1582_v21 = vpop.f32.mrf.mxu1  ;;  %892 = vst [vmem:[%s2086_s12 + $0x50] sm:$0xff] %v822_v18  ;;  %v837_v22 = vadd.f32 %v1526_v20, %v2151_v4 }
 0x172   : > { %1094 = vst [vmem:[%s2086_s12 + $0x58] sm:$0xff] %v1024_v19  ;;  %v1039_v23 = vadd.f32 %v1582_v21, %v2156_v5  ;;  %v831_v24 = vpop.f32.mrf.mxu0 }
 0x173   : > { %v1033_v25 = vpop.f32.mrf.mxu1  ;;  %895 = vst [vmem:[%s2086_s12 + $0xb0] sm:$0xff] %v837_v22  ;;  %v832_v26 = vadd.f32 %v2151_v4, %v831_v24 }
 0x174   : > { %1097 = vst [vmem:[%s2086_s12 + $0xb8] sm:$0xff] %v1039_v23  ;;  %v1034_v27 = vadd.f32 %v2156_v5, %v1033_v25  ;;  %v1529_v28 = vpop.f32.mrf.mxu0 }
 0x175   : > { %v1585_v29 = vpop.f32.mrf.mxu1  ;;  %894 = vst [vmem:[%s2086_s12 + $0x90] sm:$0xff] %v832_v26  ;;  %v847_v30 = vadd.f32 %v1529_v28, %v2151_v4 }
 0x176   : > { %1096 = vst [vmem:[%s2086_s12 + $0x98] sm:$0xff] %v1034_v27  ;;  %v1049_v31 = vadd.f32 %v1585_v29, %v2156_v5  ;;  %v841_v32 = vpop.f32.mrf.mxu0 }
 0x177   : > { %v1043_v33 = vpop.f32.mrf.mxu1  ;;  %897 = vst [vmem:[%s2086_s12 + $0xf0] sm:$0xff] %v847_v30  ;;  %v842_v34 = vadd.f32 %v2151_v4, %v841_v32 }
 0x178   : > { %1099 = vst [vmem:[%s2086_s12 + $0xf8] sm:$0xff] %v1049_v31  ;;  %v1044_v35 = vadd.f32 %v2156_v5, %v1043_v33  ;;  %v1532_v36 = vpop.f32.mrf.mxu0 }
 0x179   : > { %v1588_v37 = vpop.f32.mrf.mxu1  ;;  %896 = vst [vmem:[%s2086_s12 + $0xd0] sm:$0xff] %v842_v34  ;;  %v857_v38 = vadd.f32 %v1532_v36, %v2151_v4 }
 0x17a   : > { %1098 = vst [vmem:[%s2086_s12 + $0xd8] sm:$0xff] %v1044_v35  ;;  %v1059_v39 = vadd.f32 %v1588_v37, %v2156_v5  ;;  %v851_v40 = vpop.f32.mrf.mxu0 }
 0x17b   : > { %v1053_v41 = vpop.f32.mrf.mxu1  ;;  %899 = vst [vmem:[%s2086_s12 + $0x130] sm:$0xff] %v857_v38  ;;  %v852_v42 = vadd.f32 %v2151_v4, %v851_v40 }
 0x17c   : > { %1101 = vst [vmem:[%s2086_s12 + $0x138] sm:$0xff] %v1059_v39  ;;  %v1054_v43 = vadd.f32 %v2156_v5, %v1053_v41  ;;  %v1535_v44 = vpop.f32.mrf.mxu0 }
 0x17d   : > { %v1591_v45 = vpop.f32.mrf.mxu1  ;;  %898 = vst [vmem:[%s2086_s12 + $0x110] sm:$0xff] %v852_v42  ;;  %v867_v46 = vadd.f32 %v1535_v44, %v2151_v4 }
 0x17e   : > { %1100 = vst [vmem:[%s2086_s12 + $0x118] sm:$0xff] %v1054_v43  ;;  %v1069_v47 = vadd.f32 %v1591_v45, %v2156_v5  ;;  %v861_v48 = vpop.f32.mrf.mxu0 }
 0x17f   : > { %v1063_v49 = vpop.f32.mrf.mxu1  ;;  %901 = vst [vmem:[%s2086_s12 + $0x170] sm:$0xff] %v867_v46  ;;  %v862_v50 = vadd.f32 %v2151_v4, %v861_v48 }
 0x180   : > { %1103 = vst [vmem:[%s2086_s12 + $0x178] sm:$0xff] %v1069_v47  ;;  %v1064_v51 = vadd.f32 %v2156_v5, %v1063_v49  ;;  %v1538_v52 = vpop.f32.mrf.mxu0 }
 0x181   : > { %v1594_v53 = vpop.f32.mrf.mxu1  ;;  %900 = vst [vmem:[%s2086_s12 + $0x150] sm:$0xff] %v862_v50  ;;  %v877_v54 = vadd.f32 %v1538_v52, %v2151_v4 }
 0x182   : > { %1102 = vst [vmem:[%s2086_s12 + $0x158] sm:$0xff] %v1064_v51  ;;  %v1079_v55 = vadd.f32 %v1594_v53, %v2156_v5  ;;  %v871_v56 = vpop.f32.mrf.mxu0 }
 0x183   : > { %v1073_v57 = vpop.f32.mrf.mxu1  ;;  %903 = vst [vmem:[%s2086_s12 + $0x1b0] sm:$0xff] %v877_v54  ;;  %v872_v58 = vadd.f32 %v2151_v4, %v871_v56 }
 0x184   : > { %1105 = vst [vmem:[%s2086_s12 + $0x1b8] sm:$0xff] %v1079_v55  ;;  %v1074_v59 = vadd.f32 %v2156_v5, %v1073_v57  ;;  %v1541_v60 = vpop.f32.mrf.mxu0 }
 0x185   : > { %v1597_v61 = vpop.f32.mrf.mxu1  ;;  %902 = vst [vmem:[%s2086_s12 + $0x190] sm:$0xff] %v872_v58  ;;  %v887_v62 = vadd.f32 %v1541_v60, %v2151_v4 }
 0x186   : > { %1104 = vst [vmem:[%s2086_s12 + $0x198] sm:$0xff] %v1074_v59  ;;  %v1089_v63 = vadd.f32 %v1597_v61, %v2156_v5  ;;  %v881_v2 = vpop.f32.mrf.mxu0 }
 0x187   : > { %v1083_v3 = vpop.f32.mrf.mxu1  ;;  %905 = vst [vmem:[%s2086_s12 + $0x1f0] sm:$0xff] %v887_v62  ;;  %v882_v6 = vadd.f32 %v2151_v4, %v881_v2 }
 0x188   : > { %1107 = vst [vmem:[%s2086_s12 + $0x1f8] sm:$0xff] %v1089_v63  ;;  %v1084_v7 = vadd.f32 %v2156_v5, %v1083_v3 }
 0x189   : > { %904 = vst [vmem:[%s2086_s12 + $0x1d0] sm:$0xff] %v882_v6 }
 0x18a   : > { %1106 = vst [vmem:[%s2086_s12 + $0x1d8] sm:$0xff] %v1084_v7 }
 0x18b   : > { %1764 = shalt.err (!%p1761_p9)
}
 0x18c   : > { %s1765_s9 = scalar_lea.hbm %s2223_s16, 8192  ;;  %s1769_s13 = scalar_lea.hbm %s2279_s6, 32768 }
 0x18d   : > { %p1766_p12 = scmp.ne.s32.totalorder %s2223_s16, %s1765_s9  ;;  %p1770_p4 = scmp.lt.s32.totalorder %s2223_s16, %s2279_s6 }
 0x18e   : > { %p1771_p8 = scmp.lt.s32.totalorder %s1769_s13, %s1765_s9 }
 0x18f   : > { %p1767_p3 = pnand %p1766_p12, %p2295_p0 }
 0x190   : > { %p1772_p5 = por %p1771_p8, %p1770_p4 }
 0x191   : > { %p1768_p13 = pneg %p1767_p3 }
 0x193   : > { %p1773_p10 = pnand %p1772_p5, %p1768_p13 }
 0x195   : > { %1776 = shalt.err (!%p1773_p10)
}
 0x196   : > { %s1829_s30 = smov 512   ;;  %s1830_s7 = smov 32  }
 0x197   : > { %1608 = dma.vmem_to_hbm [thread:$0]  (%p2295_p0), %s2225_s8, 8192, %s2223_s16, %s1109_s4, %s1829_s30, %s1829_s30, %s1830_s7  }
 0x198 PF: > { %p1630_p1 = scmp.ge.s32.totalorder %s1819_s24, 2  ;;  %s1138_s10 = sand.u32 1, %s1807_s21  }
 0x199   : > { %p2296_p2 = scmp.ne.s32.totalorder %s2285_s26, 0  ;;  %s1139_s14 = scalar_lea.sflag [#allocation6], %s1138_s10 }
 0x19b   : > { %p1622_p6 = pnand %p1630_p1, %p2296_p2 }
 0x19d   : > { %p1623_p11 = pneg %p1622_p6 }
 0x19f   : > { %1802 = dma.done.wait (%p1623_p11), %s1139_s14, 8192  }
 0x1a0   : > { %1804 = vsyncadd (%p1623_p11), %s1139_s14, 4294959104  ;;  %p22_p7 = scmp.ge.s32.totalorder %s1937_s17, 6   ;;  %s2297_s21 = smov %s1811_s22 }
 0x1a1   : > { %s2298_s22 = smov %s1815_s23  ;;  %s2299_s23 = smov %s1953_s5 }
 0x1a2   : > { %s2300_s24 = smov %s1937_s17  ;;  %24 = sbr.rel (!%p22_p7) target bundleno = 6 (0x6), region = 103 }
 0x1a7   :  { %1144 = vsyncpa [#allocation5], 1 }
 0x1a8   :  { %1146 = vsyncpa [#allocation5 + $0x1], 1 }
 0x1a9   :  { %1147 = vsyncpa [#allocation8], 1 }
 0x1aa   :  { %1148 = vsyncpa [#allocation6], 1 }
 0x1ab   :  { %1150 = vsyncpa [#allocation6 + $0x1], 1 }

</bundles_post_ra>
